<compile_context>
chip_gen: v7x
topology: tpu7x:2x2x1
jax: 0.10.0
libtpu: 0.0.40
codegen_flags: <defaults>
</compile_context>

<pallas_src>
import numpy as np

import jax
import jax.numpy as jnp
from jax.experimental import pallas as pl
from jax.experimental.pallas import tpu as pltpu

IN_DIM = 3       # Node_Enc in_dim
NODE_DIM = 16    # Node_Enc out_dim / GraphEncoder in_channels
HID2 = 32        # 2 * GraphEncoder out_channels
LAT = 16         # GraphEncoder out_channels
DEC_HID = 24     # GraphDecoder hidden
N_NODES = 4

_X_W = 16                    # padded input width (4 nodes * 3 feats + 4 zeros)
_H1_W = N_NODES * 2 * IN_DIM # 24
_Z_W = N_NODES * LAT         # 64
_OUT_W = 2 * _Z_W            # 128  [x_spv | x_spr]
_ADJ_W = N_NODES * N_NODES   # 16
_EXP_W = N_NODES * _Z_W      # 256  adjacency expansion width


def _round_up(x, m):
    return (x + m - 1) // m * m


# --------------------------------------------------------------------------
# Kernel
# --------------------------------------------------------------------------
def cause2dev_kernel(
    x_ref,       # (TB, 16)   f32 packed inputs [spv|sh|level|spr|0000]
    noise_ref,   # (TB, 64)   f32 noise, node-major
    enc1_ref,    # (17, 24)   bf16: rows 0..15 = W (block-diag MLP_sh L1), row 16 = bias
    mid_ref,     # (25, 128)  bf16: fused MLP_sh L2 -> gcn1 -> [mu|logstd]
    dec1_ref,    # (65, 192)  bf16: [MLP_spv L1 | MLP_spr L1]
    dec2_ref,    # (193, 128) bf16: [MLP_spv L2 | MLP_spr L2]
    adjp_ref,    # (64, 256)  bf16: constant permuted-expansion matrix
    adjs_ref,    # (256, 16)  bf16: constant summation matrix
    out_ref,     # (TB, 128)  f32  [x_spv | x_spr]
    adj_ref,     # (TB, 16)   f32  flattened sigmoid(z z^T)
):
    def linear(x, p_ref, k, relu=False):
        # Static, 8-aligned slices: rows [0:k) = weight, row k = bias.
        w = p_ref[:k, :]
        b = p_ref[k:k + 1, :]
        y = jnp.dot(x.astype(jnp.bfloat16), w,
                    preferred_element_type=jnp.float32) + b.astype(jnp.float32)
        return jnp.maximum(y, 0.0) if relu else y

    # Node encoder first layer (4 fused MLP_sh L1) -> h, node-major along lanes.
    h = linear(x_ref[...], enc1_ref, _X_W, relu=True)        # (TB, 24)

    # Fused activation-free chain MLP_sh L2 -> GCN conv1 -> [conv_mu|conv_logstd]
    # (identity propagation for adj = eye(4)), composed offline into one weight.
    ml = linear(h, mid_ref, _H1_W)                            # (TB, 128)
    mu = ml[:, :_Z_W]
    logstd = ml[:, _Z_W:]

    # Reparametrize (f32 exp on the EUP).
    z = mu + noise_ref[...] * jnp.exp(logstd)                 # (TB, 64)

    # Decoder MLPs (spv & spr fused along lanes) -> single lane-dense store.
    dh = linear(z, dec1_ref, _Z_W, relu=True)                 # (TB, 192)
    out_ref[...] = linear(dh, dec2_ref, 3 * _Z_W)             # (TB, 128)

    # Adjacency: adj[b, n, m] = sum_d z_n[d] * z_m[d].
    #   right[:, 64k+16n+d] = z_{(n+k)%4}[d]   (one small constant matmul)
    #   left                = tile(z, 4)       (lane broadcast, VPU/XLU)
    #   adj_lin             = (left*right) @ S (constant 0/1 summation matmul)
    right = jnp.dot(z.astype(jnp.bfloat16), adjp_ref[...],
                    preferred_element_type=jnp.float32)       # (TB, 256)
    left = jnp.tile(z, (1, N_NODES))                          # (TB, 256) f32
    t = (left * right).astype(jnp.bfloat16)
    adj_lin = jnp.dot(t, adjs_ref[...],
                      preferred_element_type=jnp.float32)     # (TB, 16)
    adj_ref[...] = jax.nn.sigmoid(adj_lin)


# --------------------------------------------------------------------------
# Parameter construction / packing
# --------------------------------------------------------------------------
def _init_linear(key, fan_in, fan_out):
    # PyTorch-style uniform(-1/sqrt(fan_in), 1/sqrt(fan_in)); weight (in, out).
    kw, kb = jax.random.split(key)
    bound = 1.0 / (fan_in ** 0.5)
    w = jax.random.uniform(kw, (fan_in, fan_out), jnp.float32, -bound, bound)
    b = jax.random.uniform(kb, (1, fan_out), jnp.float32, -bound, bound)
    return w, b


def make_params(key):
    ks = jax.random.split(key, 9)
    p = {}
    p['nw1'], p['nb1'] = _init_linear(ks[0], IN_DIM, 2 * IN_DIM)     # MLP_sh L1
    p['nw2'], p['nb2'] = _init_linear(ks[1], 2 * IN_DIM, NODE_DIM)   # MLP_sh L2
    p['gw1'], p['gb1'] = _init_linear(ks[2], NODE_DIM, HID2)         # GCN conv1
    p['gwmu'], p['gbmu'] = _init_linear(ks[3], HID2, LAT)            # GCN conv_mu
    p['gwls'], p['gbls'] = _init_linear(ks[4], HID2, LAT)            # GCN conv_logstd
    p['vw1'], p['vb1'] = _init_linear(ks[5], LAT, DEC_HID)           # dec MLP_spv L1
    p['vw2'], p['vb2'] = _init_linear(ks[6], DEC_HID, LAT)           # dec MLP_spv L2
    p['rw1'], p['rb1'] = _init_linear(ks[7], LAT, DEC_HID)           # dec MLP_spr L1
    p['rw2'], p['rb2'] = _init_linear(ks[8], DEC_HID, LAT)           # dec MLP_spr L2
    return p


def _block_diag(*ws):
    rows = sum(w.shape[0] for w in ws)
    cols = sum(w.shape[1] for w in ws)
    out = jnp.zeros((rows, cols), jnp.float32)
    r = c = 0
    for w in ws:
        out = out.at[r:r + w.shape[0], c:c + w.shape[1]].set(w)
        r += w.shape[0]
        c += w.shape[1]
    return out


def _bd4(w):
    return _block_diag(w, w, w, w)


def _pack(w, b):
    # weight rows followed by one bias row -> kernel slices with static views.
    return jnp.concatenate([w, b], axis=0)


def _adj_constants():
    """0/1 constants for the adjacency matmul formulation.

    P (64,256):  (z @ P)[:, 64k+16n+d] = z_{(n+k)%4}[d]
    S (256,16):  sums each 16-lane product group into adj column 4n + (n+k)%4
    """
    P = np.zeros((_Z_W, _EXP_W), np.float32)
    S = np.zeros((_EXP_W, _ADJ_W), np.float32)
    eye = np.eye(LAT, dtype=np.float32)
    for k in range(N_NODES):
        for n in range(N_NODES):
            m = (n + k) % N_NODES
            c0 = _Z_W * k + LAT * n
            P[LAT * m:LAT * m + LAT, c0:c0 + LAT] = eye
            S[c0:c0 + LAT, N_NODES * n + m] = 1.0
    return jnp.asarray(P), jnp.asarray(S)


def pack_params(p):
    """Fold the node axis into block-diagonal weights, compose the
    activation-free middle chain offline, fuse heads along lanes, cast bf16."""
    # Node encoder L1 (same MLP_sh for all 4 nodes).  Input padded 12 -> 16 rows.
    enc1_w = jnp.concatenate(
        [_bd4(p['nw1']), jnp.zeros((4, _H1_W), jnp.float32)], axis=0)       # (16, 24)
    enc1 = _pack(enc1_w, jnp.tile(p['nb1'], (1, 4)))                        # (17, 24)

    # Fused: nodef = h@nw2+nb2 ; g = nodef@gw1+gb1 ; mu = g@gwmu+gbmu ; ls likewise.
    w_mu = p['nw2'] @ p['gw1'] @ p['gwmu']                                  # (6, 16)
    w_ls = p['nw2'] @ p['gw1'] @ p['gwls']                                  # (6, 16)
    b_g = p['nb2'] @ p['gw1'] + p['gb1']                                    # (1, 32)
    b_mu = b_g @ p['gwmu'] + p['gbmu']                                      # (1, 16)
    b_ls = b_g @ p['gwls'] + p['gbls']                                      # (1, 16)
    mid_w = jnp.concatenate([_bd4(w_mu), _bd4(w_ls)], axis=1)               # (24, 128)
    mid_b = jnp.concatenate(
        [jnp.tile(b_mu, (1, 4)), jnp.tile(b_ls, (1, 4))], axis=1)           # (1, 128)
    mid = _pack(mid_w, mid_b)                                               # (25, 128)

    # Decoder: MLP_spv | MLP_spr fused along lanes.
    dec1_w = jnp.concatenate([_bd4(p['vw1']), _bd4(p['rw1'])], axis=1)      # (64, 192)
    dec1_b = jnp.concatenate(
        [jnp.tile(p['vb1'], (1, 4)), jnp.tile(p['rb1'], (1, 4))], axis=1)   # (1, 192)
    dec1 = _pack(dec1_w, dec1_b)                                            # (65, 192)
    dec2_w = _block_diag(_bd4(p['vw2']), _bd4(p['rw2']))                    # (192, 128)
    dec2_b = jnp.concatenate(
        [jnp.tile(p['vb2'], (1, 4)), jnp.tile(p['rb2'], (1, 4))], axis=1)   # (1, 128)
    dec2 = _pack(dec2_w, dec2_b)                                            # (193, 128)

    adjP, adjS = _adj_constants()                                           # (64,256),(256,16)

    # bf16 operands for the MXU (accumulation stays f32 in-kernel).
    return tuple(a.astype(jnp.bfloat16)
                 for a in (enc1, mid, dec1, dec2, adjP, adjS))


# --------------------------------------------------------------------------
# Tile selection (generation-specific, per review)
# --------------------------------------------------------------------------
def _auto_tile(B):
    kind = ""
    try:
        kind = jax.devices()[0].device_kind.lower()
    except Exception:
        pass
    if "v6" in kind:
        cap, vmem = 4096, 64 << 20            # big tile, raise scoped VMEM
    elif "7x" in kind or "v7" in kind:
        cap, vmem = 2048, 48 << 20            # 64 MiB VMEM/TC on v7x
        # keep >=2 grid steps so the ("parallel",) axis feeds both TensorCores
        cap = max(8, min(cap, _round_up(pl.cdiv(B, 2), 8)))
    else:                                      # v5e / older / unknown
        cap, vmem = 1024, None                 # stay within default scoped VMEM
    tb = max(8, min(cap, _round_up(B, 8)))
    return tb, vmem


# --------------------------------------------------------------------------
# Wrapper
# --------------------------------------------------------------------------
def cause2dev_guid(params, dev_sh, dev_spv, dev_spr, dev_level, noise,
                   tile_b=None):
    """Returns (x_spv, x_spr, adj_dec) with shapes (B,4,16),(B,4,16),(B,4,4)."""
    B = dev_sh.shape[0]

    # Lane-dense packed input, node order [spv, sh, level, spr] + 4 zero cols.
    x = jnp.concatenate(
        [dev_spv, dev_sh, dev_level, dev_spr,
         jnp.zeros((B, _X_W - 4 * IN_DIM), jnp.float32)], axis=1)    # (B, 16)
    nz = noise.reshape(B, _Z_W).astype(jnp.float32)                  # (B, 64)

    if tile_b is None:
        tb, vmem = _auto_tile(B)
    else:
        tb, vmem = max(8, min(tile_b, _round_up(B, 8))), None

    b_pad = _round_up(B, tb)
    if b_pad != B:
        x = jnp.pad(x, ((0, b_pad - B), (0, 0)))
        nz = jnp.pad(nz, ((0, b_pad - B), (0, 0)))

    packed = pack_params(params)
    grid = (b_pad // tb,)

    def data_spec(width):
        return pl.BlockSpec((tb, width), lambda i: (i, 0))

    def const_spec(arr):
        # Full array, constant index map -> resident across the whole grid.
        return pl.BlockSpec(arr.shape, lambda i: (0, 0))

    out, adj = pl.pallas_call(
        cause2dev_kernel,
        out_shape=(
            jax.ShapeDtypeStruct((b_pad, _OUT_W), jnp.float32),   # [x_spv|x_spr]
            jax.ShapeDtypeStruct((b_pad, _ADJ_W), jnp.float32),   # adj flat
        ),
        grid=grid,
        in_specs=[data_spec(_X_W), data_spec(_Z_W)]
                 + [const_spec(a) for a in packed],
        out_specs=(data_spec(_OUT_W), data_spec(_ADJ_W)),
        compiler_params=pltpu.CompilerParams(
            dimension_semantics=("parallel",),     # megacore split on v7x
            vmem_limit_bytes=vmem),
    )(x, nz, *packed)

    x_spv = out[:B, :_Z_W].reshape(B, N_NODES, LAT)
    x_spr = out[:B, _Z_W:].reshape(B, N_NODES, LAT)
    adj_dec = adj[:B].reshape(B, N_NODES, N_NODES)
    return x_spv, x_spr, adj_dec


# --------------------------------------------------------------------------
# Pure-JAX f32 reference (mirrors the PyTorch forward) for a sanity check.
# --------------------------------------------------------------------------
def _reference(p, dev_sh, dev_spv, dev_spr, dev_level, noise):
    def mlp_sh(u):
        h = jnp.maximum(u @ p['nw1'] + p['nb1'], 0.0)
        return h @ p['nw2'] + p['nb2']

    nodef = jnp.stack(
        [mlp_sh(dev_spv), mlp_sh(dev_sh), mlp_sh(dev_level), mlp_sh(dev_spr)],
        axis=1)                                                     # (B,4,16)
    h = jnp.einsum('bnd,de->bne', nodef, p['gw1']) + p['gb1']
    mu = jnp.einsum('bnd,de->bne', h, p['gwmu']) + p['gbmu']
    ls = jnp.einsum('bnd,de->bne', h, p['gwls']) + p['gbls']
    z = mu + noise * jnp.exp(ls)
    adj = jax.nn.sigmoid(jnp.einsum('bnd,bmd->bnm', z, z))

    def dec(x, w1, b1, w2, b2):
        hh = jnp.maximum(jnp.einsum('bnd,de->bne', x, w1) + b1, 0.0)
        return jnp.einsum('bnd,de->bne', hh, w2) + b2

    return (dec(z, p['vw1'], p['vb1'], p['vw2'], p['vb2']),
            dec(z, p['rw1'], p['rb1'], p['rw2'], p['rb2']),
            adj)


if __name__ == "__main__":
    key = jax.random.PRNGKey(0)
    kp, k1, k2, k3, k4, kn = jax.random.split(key, 6)

    params = make_params(kp)

    B = 2
    dev_sh = jax.random.normal(k1, (B, IN_DIM), jnp.float32)
    dev_spv = jax.random.normal(k2, (B, IN_DIM), jnp.float32)
    dev_spr = jax.random.normal(k3, (B, IN_DIM), jnp.float32)
    dev_level = jax.random.normal(k4, (B, IN_DIM), jnp.float32)
    # stands in for torch.randn_like(logstd) in GraphEncoder.reparametrize
    noise = jax.random.normal(kn, (B, N_NODES, LAT), jnp.float32)

    x_spv, x_spr, adj_dec = cause2dev_guid(
        params, dev_sh, dev_spv, dev_spr, dev_level, noise)
    jax.block_until_ready((x_spv, x_spr, adj_dec))

    assert x_spv.shape == (B, N_NODES, LAT)
    assert x_spr.shape == (B, N_NODES, LAT)
    assert adj_dec.shape == (B, N_NODES, N_NODES)

    r_spv, r_spr, r_adj = _reference(
        params, dev_sh, dev_spv, dev_spr, dev_level, noise)
    # bf16 MXU operands (f32 accumulation) vs. the f32 reference: ~1e-2-level
    # rounding; adj accumulates the most (32-term z.z dot through two bf16
    # layers), so it gets a slightly larger atol.
    assert bool(jnp.allclose(x_spv, r_spv, rtol=2e-2, atol=2e-2))
    assert bool(jnp.allclose(x_spr, r_spr, rtol=2e-2, atol=2e-2))
    assert bool(jnp.allclose(adj_dec, r_adj, rtol=2e-2, atol=3e-2))

    print("KERNEL_OK")
</pallas_src>

<mosaic_0001>
module attributes {stable_mosaic.version = 11 : i64} {
  func.func @cause2dev_kernel(%arg0: i32, %arg1: memref<8x16xf32, #tpu.memory_space<vmem>>, %arg2: memref<8x64xf32, #tpu.memory_space<vmem>>, %arg3: memref<17x24xbf16, #tpu.memory_space<vmem>>, %arg4: memref<25x128xbf16, #tpu.memory_space<vmem>>, %arg5: memref<65x192xbf16, #tpu.memory_space<vmem>>, %arg6: memref<193x128xbf16, #tpu.memory_space<vmem>>, %arg7: memref<64x256xbf16, #tpu.memory_space<vmem>>, %arg8: memref<256x16xbf16, #tpu.memory_space<vmem>>, %arg9: memref<8x128xf32, #tpu.memory_space<vmem>>, %arg10: memref<8x16xf32, #tpu.memory_space<vmem>>) attributes {dimension_semantics = [#tpu.dimension_semantics<parallel>], iteration_bounds = array<i64: 1>, scalar_prefetch = 0 : i64, scratch_operands = 0 : i64, tpu.core_type = #tpu.core_type<tc>, window_params = [{transform_indices = @transform_0, window_bounds = array<i64: 8, 16>}, {transform_indices = @transform_1, window_bounds = array<i64: 8, 64>}, {pipeline_mode = #tpu.pipeline_mode<synchronous>, transform_indices = @transform_2, window_bounds = array<i64: 17, 24>}, {pipeline_mode = #tpu.pipeline_mode<synchronous>, transform_indices = @transform_3, window_bounds = array<i64: 25, 128>}, {pipeline_mode = #tpu.pipeline_mode<synchronous>, transform_indices = @transform_4, window_bounds = array<i64: 65, 192>}, {pipeline_mode = #tpu.pipeline_mode<synchronous>, transform_indices = @transform_5, window_bounds = array<i64: 193, 128>}, {pipeline_mode = #tpu.pipeline_mode<synchronous>, transform_indices = @transform_6, window_bounds = array<i64: 64, 256>}, {pipeline_mode = #tpu.pipeline_mode<synchronous>, transform_indices = @transform_7, window_bounds = array<i64: 256, 16>}, {transform_indices = @transform_8, window_bounds = array<i64: 8, 128>}, {transform_indices = @transform_9, window_bounds = array<i64: 8, 16>}]} {
    %c0 = arith.constant 0 : index
    %c0_0 = arith.constant 0 : index
    %0 = vector.load %arg1[%c0, %c0_0] : memref<8x16xf32, #tpu.memory_space<vmem>>, vector<8x16xf32>
    %c0_1 = arith.constant 0 : index
    %c0_2 = arith.constant 0 : index
    %1 = vector.load %arg3[%c0_1, %c0_2] : memref<17x24xbf16, #tpu.memory_space<vmem>>, vector<16x24xbf16>
    %c16 = arith.constant 16 : index
    %c0_3 = arith.constant 0 : index
    %2 = vector.load %arg3[%c16, %c0_3] : memref<17x24xbf16, #tpu.memory_space<vmem>>, vector<1x24xbf16>
    %3 = arith.truncf %0 : vector<8x16xf32> to vector<8x16xbf16>
    %cst = arith.constant dense<0.000000e+00> : vector<8x24xf32>
    %4 = tpu.matmul %3, %1, %cst {dimension_numbers = #tpu.dot_dimension_numbers<[1], [0], [0], [1], [0, 0, 1, 1], [], []>} : vector<8x16xbf16>, vector<16x24xbf16>, vector<8x24xf32> -> vector<8x24xf32>
    %5 = arith.extf %2 : vector<1x24xbf16> to vector<1x24xf32>
    %6 = vector.broadcast %5 : vector<1x24xf32> to vector<8x24xf32>
    %7 = arith.addf %4, %6 : vector<8x24xf32>
    %cst_4 = arith.constant 0.000000e+00 : f32
    %8 = vector.broadcast %cst_4 : f32 to vector<8x24xf32>
    %9 = arith.maximumf %7, %8 : vector<8x24xf32>
    %c0_5 = arith.constant 0 : index
    %c0_6 = arith.constant 0 : index
    %10 = vector.load %arg4[%c0_5, %c0_6] : memref<25x128xbf16, #tpu.memory_space<vmem>>, vector<24x128xbf16>
    %c24 = arith.constant 24 : index
    %c0_7 = arith.constant 0 : index
    %11 = vector.load %arg4[%c24, %c0_7] : memref<25x128xbf16, #tpu.memory_space<vmem>>, vector<1x128xbf16>
    %12 = arith.truncf %9 : vector<8x24xf32> to vector<8x24xbf16>
    %cst_8 = arith.constant dense<0.000000e+00> : vector<8x128xf32>
    %13 = tpu.matmul %12, %10, %cst_8 {dimension_numbers = #tpu.dot_dimension_numbers<[1], [0], [0], [1], [0, 0, 1, 1], [], []>} : vector<8x24xbf16>, vector<24x128xbf16>, vector<8x128xf32> -> vector<8x128xf32>
    %14 = arith.extf %11 : vector<1x128xbf16> to vector<1x128xf32>
    %15 = vector.broadcast %14 : vector<1x128xf32> to vector<8x128xf32>
    %16 = arith.addf %13, %15 : vector<8x128xf32>
    %17 = vector.extract_strided_slice %16 {offsets = [0, 0], sizes = [8, 64], strides = [1, 1]} : vector<8x128xf32> to vector<8x64xf32>
    %18 = vector.extract_strided_slice %16 {offsets = [0, 64], sizes = [8, 64], strides = [1, 1]} : vector<8x128xf32> to vector<8x64xf32>
    %c0_9 = arith.constant 0 : index
    %c0_10 = arith.constant 0 : index
    %19 = vector.load %arg2[%c0_9, %c0_10] : memref<8x64xf32, #tpu.memory_space<vmem>>, vector<8x64xf32>
    %20 = math.exp %18 : vector<8x64xf32>
    %21 = arith.mulf %19, %20 : vector<8x64xf32>
    %22 = arith.addf %17, %21 : vector<8x64xf32>
    %c0_11 = arith.constant 0 : index
    %c0_12 = arith.constant 0 : index
    %23 = vector.load %arg5[%c0_11, %c0_12] : memref<65x192xbf16, #tpu.memory_space<vmem>>, vector<64x192xbf16>
    %c64 = arith.constant 64 : index
    %c0_13 = arith.constant 0 : index
    %24 = vector.load %arg5[%c64, %c0_13] : memref<65x192xbf16, #tpu.memory_space<vmem>>, vector<1x192xbf16>
    %25 = arith.truncf %22 : vector<8x64xf32> to vector<8x64xbf16>
    %cst_14 = arith.constant dense<0.000000e+00> : vector<8x192xf32>
    %26 = tpu.matmul %25, %23, %cst_14 {dimension_numbers = #tpu.dot_dimension_numbers<[1], [0], [0], [1], [0, 0, 1, 1], [], []>} : vector<8x64xbf16>, vector<64x192xbf16>, vector<8x192xf32> -> vector<8x192xf32>
    %27 = arith.extf %24 : vector<1x192xbf16> to vector<1x192xf32>
    %28 = vector.broadcast %27 : vector<1x192xf32> to vector<8x192xf32>
    %29 = arith.addf %26, %28 : vector<8x192xf32>
    %cst_15 = arith.constant 0.000000e+00 : f32
    %30 = vector.broadcast %cst_15 : f32 to vector<8x192xf32>
    %31 = arith.maximumf %29, %30 : vector<8x192xf32>
    %c0_16 = arith.constant 0 : index
    %c0_17 = arith.constant 0 : index
    %32 = vector.load %arg6[%c0_16, %c0_17] : memref<193x128xbf16, #tpu.memory_space<vmem>>, vector<192x128xbf16>
    %c192 = arith.constant 192 : index
    %c0_18 = arith.constant 0 : index
    %33 = vector.load %arg6[%c192, %c0_18] : memref<193x128xbf16, #tpu.memory_space<vmem>>, vector<1x128xbf16>
    %34 = arith.truncf %31 : vector<8x192xf32> to vector<8x192xbf16>
    %cst_19 = arith.constant dense<0.000000e+00> : vector<8x128xf32>
    %35 = tpu.matmul %34, %32, %cst_19 {dimension_numbers = #tpu.dot_dimension_numbers<[1], [0], [0], [1], [0, 0, 1, 1], [], []>} : vector<8x192xbf16>, vector<192x128xbf16>, vector<8x128xf32> -> vector<8x128xf32>
    %36 = arith.extf %33 : vector<1x128xbf16> to vector<1x128xf32>
    %37 = vector.broadcast %36 : vector<1x128xf32> to vector<8x128xf32>
    %38 = arith.addf %35, %37 : vector<8x128xf32>
    %c0_20 = arith.constant 0 : index
    %c0_21 = arith.constant 0 : index
    %39 = vector.load %arg9[%c0_20, %c0_21] : memref<8x128xf32, #tpu.memory_space<vmem>>, vector<8x128xf32>
    tpu.vector_store %arg9[%c0_20, %c0_21], %38 {strides = array<i32>} : memref<8x128xf32, #tpu.memory_space<vmem>>, vector<8x128xf32>,
    %40 = arith.truncf %22 : vector<8x64xf32> to vector<8x64xbf16>
    %c0_22 = arith.constant 0 : index
    %c0_23 = arith.constant 0 : index
    %41 = vector.load %arg7[%c0_22, %c0_23] : memref<64x256xbf16, #tpu.memory_space<vmem>>, vector<64x256xbf16>
    %cst_24 = arith.constant dense<0.000000e+00> : vector<8x256xf32>
    %42 = tpu.matmul %40, %41, %cst_24 {dimension_numbers = #tpu.dot_dimension_numbers<[1], [0], [0], [1], [0, 0, 1, 1], [], []>} : vector<8x64xbf16>, vector<64x256xbf16>, vector<8x256xf32> -> vector<8x256xf32>
    %43 = tpu.concatenate %22, %22, %22, %22 in 1 : vector<8x64xf32>, vector<8x64xf32>, vector<8x64xf32>, vector<8x64xf32> -> vector<8x256xf32>
    %44 = arith.mulf %43, %42 : vector<8x256xf32>
    %45 = arith.truncf %44 : vector<8x256xf32> to vector<8x256xbf16>
    %c0_25 = arith.constant 0 : index
    %c0_26 = arith.constant 0 : index
    %46 = vector.load %arg8[%c0_25, %c0_26] : memref<256x16xbf16, #tpu.memory_space<vmem>>, vector<256x16xbf16>
    %cst_27 = arith.constant dense<0.000000e+00> : vector<8x16xf32>
    %47 = tpu.matmul %45, %46, %cst_27 {dimension_numbers = #tpu.dot_dimension_numbers<[1], [0], [0], [1], [0, 0, 1, 1], [], []>} : vector<8x256xbf16>, vector<256x16xbf16>, vector<8x16xf32> -> vector<8x16xf32>
    %48 = arith.negf %47 : vector<8x16xf32>
    %49 = math.exp %48 : vector<8x16xf32>
    %cst_28 = arith.constant 1.000000e+00 : f32
    %50 = vector.broadcast %cst_28 : f32 to vector<8x16xf32>
    %51 = arith.addf %50, %49 : vector<8x16xf32>
    %52 = arith.divf %50, %51 : vector<8x16xf32>
    %c0_29 = arith.constant 0 : index
    %c0_30 = arith.constant 0 : index
    %53 = vector.load %arg10[%c0_29, %c0_30] : memref<8x16xf32, #tpu.memory_space<vmem>>, vector<8x16xf32>
    tpu.vector_store %arg10[%c0_29, %c0_30], %52 {strides = array<i32>} : memref<8x16xf32, #tpu.memory_space<vmem>>, vector<8x16xf32>,
    return
  }
  func.func @transform_0(%arg0: i32) -> (i32, i32) {
    %c0_i32 = arith.constant 0 : i32
    %c0_i32_0 = arith.constant 0 : i32
    return %arg0, %c0_i32 : i32, i32
  }
  func.func @transform_1(%arg0: i32) -> (i32, i32) {
    %c0_i32 = arith.constant 0 : i32
    %c0_i32_0 = arith.constant 0 : i32
    return %arg0, %c0_i32 : i32, i32
  }
  func.func @transform_2(%arg0: i32) -> (i32, i32) {
    %c0_i32 = arith.constant 0 : i32
    %c0_i32_0 = arith.constant 0 : i32
    %c0_i32_1 = arith.constant 0 : i32
    return %c0_i32, %c0_i32_0 : i32, i32
  }
  func.func @transform_3(%arg0: i32) -> (i32, i32) {
    %c0_i32 = arith.constant 0 : i32
    %c0_i32_0 = arith.constant 0 : i32
    %c0_i32_1 = arith.constant 0 : i32
    return %c0_i32, %c0_i32_0 : i32, i32
  }
  func.func @transform_4(%arg0: i32) -> (i32, i32) {
    %c0_i32 = arith.constant 0 : i32
    %c0_i32_0 = arith.constant 0 : i32
    %c0_i32_1 = arith.constant 0 : i32
    return %c0_i32, %c0_i32_0 : i32, i32
  }
  func.func @transform_5(%arg0: i32) -> (i32, i32) {
    %c0_i32 = arith.constant 0 : i32
    %c0_i32_0 = arith.constant 0 : i32
    %c0_i32_1 = arith.constant 0 : i32
    return %c0_i32, %c0_i32_0 : i32, i32
  }
  func.func @transform_6(%arg0: i32) -> (i32, i32) {
    %c0_i32 = arith.constant 0 : i32
    %c0_i32_0 = arith.constant 0 : i32
    %c0_i32_1 = arith.constant 0 : i32
    return %c0_i32, %c0_i32_0 : i32, i32
  }
  func.func @transform_7(%arg0: i32) -> (i32, i32) {
    %c0_i32 = arith.constant 0 : i32
    %c0_i32_0 = arith.constant 0 : i32
    %c0_i32_1 = arith.constant 0 : i32
    return %c0_i32, %c0_i32_0 : i32, i32
  }
  func.func @transform_8(%arg0: i32) -> (i32, i32) {
    %c0_i32 = arith.constant 0 : i32
    %c0_i32_0 = arith.constant 0 : i32
    return %arg0, %c0_i32 : i32, i32
  }
  func.func @transform_9(%arg0: i32) -> (i32, i32) {
    %c0_i32 = arith.constant 0 : i32
    %c0_i32_0 = arith.constant 0 : i32
    return %arg0, %c0_i32 : i32, i32
  }
}

</mosaic_0001>

<bundles_post_ra>
// kernel: tpu_custom_call.1
= control target key start
LH: loop header
LB: loop body
LE: loop exit
PB: predicated region body
PF: predicated region fallthrough
CT: control target
= control target key end

     0   :  { %15 = vsyncpa [#allocation3], 0  ;;  %s1427_s0 = inlined_call_operand.hbm [shape: f32[8,16], index: 0, kind: input, shape index: {}]   ;;  %s1428_s1 = inlined_call_operand.hbm [shape: f32[8,64], index: 1, kind: input, shape index: {}]   ;;  %s1429_s2 = inlined_call_operand.hbm [shape: bf16[17,24], index: 2, kind: input, shape index: {}]   ;;  %s1430_s3 = inlined_call_operand.hbm [shape: bf16[25,128], index: 3, kind: input, shape index: {}]   ;;  %s1431_s4 = inlined_call_operand.hbm [shape: bf16[65,192], index: 4, kind: input, shape index: {}]   ;;  %s1432_s5 = inlined_call_operand.vmem [shape: bf16[193,128], index: 5, kind: input, shape index: {}]   ;;  %s1433_s6 = inlined_call_operand.vmem [shape: bf16[64,256], index: 6, kind: input, shape index: {}]   ;;  %s1434_s7 = inlined_call_operand.vmem [shape: bf16[256,16], index: 7, kind: input, shape index: {}]   ;;  %s1435_s8 = inlined_call_operand.hbm [shape: f32[8,128], index: 8, kind: output, shape index: {0}]   ;;  %s1436_s9 = inlined_call_operand.hbm [shape: f32[8,16], index: 9, kind: output, shape index: {1}]  }
   0x1   :  { %16 = vsyncpa [#allocation6], 0 }
   0x2   :  { %17 = vsyncpa [#allocation9], 0 }
   0x3   :  { %18 = vsyncpa [#allocation4], 0 }
   0x4   :  { %19 = vsyncpa [#allocation13], 0  ;;  %s1127_s30 = smov [#allocation5]   ;;  %s963_s13 = scalar_lea.hbm %s1428_s1, 128 }
   0x5   :  { %s36_s10 = sshll.u32 %s1127_s30, 4  ;;  %p964_p0 = scmp.ne.s32.totalorder %s1428_s1, %s963_s13  ;;  %s37_s10 = int_to_ptr.vmem [resolvable:$true] %s36_s10 }
   0x6   :  { %p967_p1 = scmp.lt.u32.totalorder %s963_s13, %s1428_s1 }
   0x8   :  { %p969_p2 = pnand %p967_p1, %p964_p0 }
   0xa   :  { %972 = shalt.err (!%p969_p2)
}
   0xb   :  { %s973_s18 = scalar_lea.vmem %s37_s10, 128  ;;  %p978_p4 = scmp.lt.s32.totalorder %s37_s10, %s37_s10 }
   0xc   :  { %p974_p3 = scmp.ne.s32.totalorder %s37_s10, %s973_s18  ;;  %p979_p5 = scmp.lt.s32.totalorder %s973_s18, %s973_s18 }
   0xe   :  { %p980_p6 = por %p979_p5, %p978_p4 }
  0x10   :  { %p981_p7 = pnand %p980_p6, %p974_p3 }
  0x12   :  { %984 = shalt.err (!%p981_p7)
}
  0x13   :  { %39 = dma.hbm_to_vmem [thread:$0]  %s1428_s1, 128, %s37_s10, [#allocation6]  }
  0x14   :  { %s1128_s21 = smov [#allocation8]   ;;  %s1129_s23 = smov [#allocation2]  }
  0x15   :  { %s57_s22 = sshll.u32 %s1128_s21, 4  ;;  %s26_s24 = sshll.u32 %s1129_s23, 4  ;;  %s58_s22 = int_to_ptr.vmem [resolvable:$true] %s57_s22  ;;  %s27_s24 = int_to_ptr.vmem [resolvable:$true] %s26_s24 }
  0x16   :  { %s985_s27 = scalar_lea.hbm %s1430_s3, 256 }
  0x17   :  { %p986_p8 = scmp.ne.s32.totalorder %s1430_s3, %s985_s27  ;;  %p989_p9 = scmp.lt.u32.totalorder %s985_s27, %s1430_s3 }
  0x19   :  { %p991_p10 = pnand %p989_p9, %p986_p8 }
  0x1b   :  { %994 = shalt.err (!%p991_p10)
}
  0x1c   :  { %s995_s1 = scalar_lea.vmem %s58_s22, 256  ;;  %p1000_p12 = scmp.lt.s32.totalorder %s58_s22, %s58_s22 }
  0x1d   :  { %p996_p11 = scmp.ne.s32.totalorder %s58_s22, %s995_s1  ;;  %p1001_p13 = scmp.lt.s32.totalorder %s995_s1, %s995_s1 }
  0x1f   :  { %p1002_p0 = por %p1001_p13, %p1000_p12 }
  0x21   :  { %p1003_p1 = pnand %p1002_p0, %p996_p11 }
  0x23   :  { %1006 = shalt.err (!%p1003_p1)
}
  0x24   :  { %s1130_s10 = smov 64   ;;  %s1131_s12 = smov 4  }
  0x25   :  { %63 = dma.hbm_to_vmem [thread:$0]  %s1430_s3, 256, %s58_s22, [#allocation9], %s1130_s10, %s1130_s10, %s1131_s12  }
  0x26   :  { %s1007_s17 = scalar_lea.hbm %s1427_s0, 128 }
  0x27   :  { %p1008_p2 = scmp.ne.s32.totalorder %s1427_s0, %s1007_s17  ;;  %p1011_p3 = scmp.lt.u32.totalorder %s1007_s17, %s1427_s0 }
  0x29   :  { %p1013_p4 = pnand %p1011_p3, %p1008_p2 }
  0x2b   :  { %1016 = shalt.err (!%p1013_p4)
}
  0x2c   :  { %s1017_s23 = scalar_lea.vmem %s27_s24, 128  ;;  %p1022_p6 = scmp.lt.s32.totalorder %s27_s24, %s27_s24 }
  0x2d   :  { %p1018_p5 = scmp.ne.s32.totalorder %s27_s24, %s1017_s23  ;;  %p1023_p7 = scmp.lt.s32.totalorder %s1017_s23, %s1017_s23 }
  0x2f   :  { %p1024_p8 = por %p1023_p7, %p1022_p6 }
  0x31   :  { %p1025_p9 = pnand %p1024_p8, %p1018_p5 }
  0x33   :  { %1028 = shalt.err (!%p1025_p9)
}
  0x34   :  { %29 = dma.hbm_to_vmem [thread:$0]  %s1427_s0, 128, %s27_s24, [#allocation3]  }
  0x35   :  { %s1132_s25 = smov [#allocation7]   ;;  %s1133_s27 = smov [#allocation10]  }
  0x36   :  { %s45_s26 = sshll.u32 %s1132_s25, 4  ;;  %s69_s28 = sshll.u32 %s1133_s27, 4  ;;  %s46_s26 = int_to_ptr.vmem [resolvable:$true] %s45_s26  ;;  %s70_s28 = int_to_ptr.vmem [resolvable:$true] %s69_s28 }
  0x37   :  { %s1029_s11 = scalar_lea.hbm %s1429_s2, 192 }
  0x38   :  { %p1030_p10 = scmp.ne.s32.totalorder %s1429_s2, %s1029_s11  ;;  %p1033_p11 = scmp.lt.u32.totalorder %s1029_s11, %s1429_s2 }
  0x3a   :  { %p1035_p12 = pnand %p1033_p11, %p1030_p10 }
  0x3c   :  { %1038 = shalt.err (!%p1035_p12)
}
  0x3d   :  { %s1039_s0 = scalar_lea.vmem %s46_s26, 192  ;;  %p1044_p0 = scmp.lt.s32.totalorder %s46_s26, %s46_s26 }
  0x3e   :  { %p1040_p13 = scmp.ne.s32.totalorder %s46_s26, %s1039_s0  ;;  %p1045_p1 = scmp.lt.s32.totalorder %s1039_s0, %s1039_s0 }
  0x40   :  { %p1046_p2 = por %p1045_p1, %p1044_p0 }
  0x42   :  { %p1047_p3 = pnand %p1046_p2, %p1040_p13 }
  0x44   :  { %1050 = shalt.err (!%p1047_p3)
}
  0x45   :  { %51 = dma.hbm_to_vmem [thread:$0]  %s1429_s2, 192, %s46_s26, [#allocation6], %s1130_s10, %s1130_s10, %s1131_s12  }
  0x46   :  { %s1051_s19 = scalar_lea.hbm %s1431_s4, 1152 }
  0x47   :  { %p1052_p4 = scmp.ne.s32.totalorder %s1431_s4, %s1051_s19  ;;  %p1055_p5 = scmp.lt.u32.totalorder %s1051_s19, %s1431_s4 }
  0x49   :  { %p1057_p6 = pnand %p1055_p5, %p1052_p4 }
  0x4b   :  { %1060 = shalt.err (!%p1057_p6)
}
  0x4c   :  { %s1061_s22 = scalar_lea.vmem %s70_s28, 1152  ;;  %p1066_p8 = scmp.lt.s32.totalorder %s70_s28, %s70_s28 }
  0x4d   :  { %p1062_p7 = scmp.ne.s32.totalorder %s70_s28, %s1061_s22  ;;  %p1067_p9 = scmp.lt.s32.totalorder %s1061_s22, %s1061_s22 }
  0x4f   :  { %p1068_p10 = por %p1067_p9, %p1066_p8 }
  0x51   :  { %p1069_p11 = pnand %p1068_p10, %p1062_p7 }
  0x53   :  { %1072 = shalt.err (!%p1069_p11)
}
  0x54   :  { %s1134_s2 = smov 128   ;;  %s1135_s12 = smov 8  }
  0x55   :  { %75 = dma.hbm_to_vmem [thread:$0]  %s1431_s4, 1152, %s70_s28, [#allocation9], %s1134_s2, %s1134_s2, %s1135_s12  }
  0x56   :  { %1117 = dma.done.wait [#allocation3], 128  }
  0x57   :  { %1118 = vsyncadd [#allocation3], 4294967168 }
  0x58   :  { %1119 = dma.done.wait [#allocation6], 320  }
  0x59   :  { %1120 = vsyncadd [#allocation6], 4294966976 }
  0x5a   :  { %1121 = dma.done.wait [#allocation9], 1408  }
  0x5b   :  { %1122 = vsyncadd [#allocation9], 4294965888  ;;  %v1136_v0 = vmov 0.0   ;;  %vm1137_vm0 = vmmov 0   ;;  %v902_v1 = vld [vmem:[#allocation7] sm:$0xff]   ;;  %v98_v2 = vld [vmem:[#allocation2] sm:$0xff]  ;;  %v104_v7 = vlaneseq }
  0x5c   :  { %874 = vmatprep.subr.bf16.mxu1 %v1136_v0  ;;  %876 = vmatprep.mubr.msk.bf16.mxu1 %vm1137_vm0, %v1136_v0  ;;  %v102_v3 = vpack.c.bf16 %v98_v2, %v98_v2  ;;  %vm114_vm1 = vcmask 130048   ;;  %v903_v4 = vld [vmem:[#allocation8] sm:$0xff]   ;;  %v904_v5 = vld [vmem:[#allocation8 + $0x8] ss:$0 sps:$4 sm:$0xff]   ;;  %vm182_vm2 = vcmask 1043456   ;;  %vm178_vm3 = vcmask 195584  }
  0x5d   :  { %875 = vmatpush3.bf16.msra.mxu1 %v902_v1  ;;  %v184_v6 = vsel %vm182_vm2, %v904_v5, 0  ;;  %v105_v8 = vshrl.u32 %v104_v7, 7  ;;  %v101_v9 = vld [vmem:[#allocation7 + $0x8] sm:$0x1]  ;;  %v907_v21 = vld [vmem:[#allocation10] ss:$8 sps:$4 sm:$0xff]  }
  0x5e   :  { %880 = vmatprep.subr.bf16.mxu1 %v1136_v0  ;;  %v103_v10 = vunpack.c.l.bf16 %v101_v9  ;;  %v905_v20 = vld [vmem:[#allocation10 + $0x4] ss:$8 sps:$4 sm:$0xff]   ;;  %v908_v22 = vld [vmem:[#allocation10 + $0x14] ss:$8 sps:$4 sm:$0xff]   ;;  %v910_v23 = vld [vmem:[#allocation10 + $0x10] ss:$8 sps:$4 sm:$0xff]  }
  0x5f   :  { %v1258_v11 = vsub.s32 0, %v105_v8  ;;  %299 = vmatprep.subr.bf16.mxu0 %v905_v20  ;;  %v911_v24 = vld [vmem:[#allocation10 + $0x24] ss:$8 sps:$4 sm:$0xff]   ;;  %v913_v25 = vld [vmem:[#allocation10 + $0x20] ss:$8 sps:$4 sm:$0xff]   ;;  %v1138_v38 = vmov 0  }
  0x60   :  { %877 = vmatmul.mubr.msk.bf16.vlgmr.msra.gmra.mrb[0].mxu1 %vm114_vm1, %v102_v3  ;;  %300 = vmatpush1.bf16.msra.mxu0 %v907_v21  ;;  %v162_v26 = vld [vmem:[#allocation8 + $0xc] sm:$0x1]  ;;  %v916_v36 = vld [vmem:[#allocation10 + $0x30] ss:$8 sps:$4 sm:$0xff]   ;;  %v931_v42 = vld [vmem:[%s1432_s5 + $0x10] sm:$0xff]   ;;  %vm295_vm4 = vcmask 523264  }
  0x61   :  { %881 = vmatpush3.bf16.msra.mxu1 %v903_v4  ;;  %884 = vmatprep.mubr.msk.bf16.mxu1 %vm1137_vm0, %v1136_v0  ;;  %v107_v12 = vrot.slane %v103_v10, %v1258_v11  ;;  %v164_v27 = vunpack.c.l.bf16 %v162_v26  ;;  %v914_v33 = vld [vmem:[#allocation10 + $0x34] ss:$8 sps:$4 sm:$0xff]   ;;  %v919_v37 = vld [vmem:[%s1433_s6 + $0x4] ss:$8 sps:$4 sm:$0xff]   ;;  %v932_v46 = vld [vmem:[%s1432_s5 + $0x18] sm:$0xff]   ;;  %s1139_s23 = smov [#allocation11]  }
  0x62   :  { %882 = vmatprep.subr.bf16.mxu1 %v1136_v0  ;;  %301 = vmatprep.subr.bf16.mxu0 %v908_v22  ;;  %v929_v40 = vld [vmem:[%s1432_s5] sm:$0xff]   ;;  %v930_v41 = vld [vmem:[%s1432_s5 + $0x8] sm:$0xff]   ;;  %v922_v50 = vld [vmem:[%s1433_s6 + $0x14] ss:$8 sps:$4 sm:$0xff]   ;;  %s769_s3 = sshll.u32 %s1139_s23, 4  ;;  %s770_s3 = int_to_ptr.vmem [resolvable:$true] %s769_s3 }
  0x63   :  { %v168_v28 = vrot.slane %v164_v27, %v1258_v11  ;;  %331 = vmatprep.mubr.bf16.mxu0 %v1138_v38  ;;  %v226_v43 = vld [vmem:[#allocation5] sm:$0xff]  ;;  %v933_v51 = vld [vmem:[%s1432_s5 + $0x20] sm:$0xff]   ;;  %v920_v52 = vld [vmem:[%s1433_s6 + $0x10] ss:$8 sps:$4 sm:$0xff]   ;;  %s1073_s22 = scalar_lea.vmem %s770_s3, 128  ;;  %p1078_p13 = scmp.lt.s32.totalorder %s770_s3, %s770_s3 }
  0x64   :  { %302 = vmatpush1.bf16.msra.mxu0 %v910_v23  ;;  %v917_v48 = vld [vmem:[%s1433_s6] ss:$8 sps:$4 sm:$0xff]   ;;  %v925_v53 = vld [vmem:[%s1433_s6 + $0x24] ss:$8 sps:$4 sm:$0xff]   ;;  %v928_v56 = vld [vmem:[%s1433_s6 + $0x34] ss:$8 sps:$4 sm:$0xff]   ;;  %p1074_p12 = scmp.ne.s32.totalorder %s770_s3, %s1073_s22  ;;  %p1079_p0 = scmp.lt.s32.totalorder %s1073_s22, %s1073_s22 }
  0x65   :  { %883 = vmatpush3.bf16.msra.mxu1 %v184_v6  ;;  %303 = vmatprep.subr.bf16.mxu0 %v911_v24  ;;  %v934_v54 = vld [vmem:[%s1432_s5 + $0x28] sm:$0xff]   ;;  %v935_v57 = vld [vmem:[%s1432_s5 + $0x30] sm:$0xff]   ;;  %v936_v59 = vld [vmem:[%s1432_s5 + $0x38] sm:$0xff]  }
  0x66   :  { %449 = vmatprep.subr.bf16.mxu1 %v1138_v38  ;;  %v923_v55 = vld [vmem:[%s1433_s6 + $0x20] ss:$8 sps:$4 sm:$0xff]   ;;  %v926_v58 = vld [vmem:[%s1433_s6 + $0x30] ss:$8 sps:$4 sm:$0xff]   ;;  %p1080_p1 = por %p1079_p0, %p1078_p13 }
  0x67   :  { %v937_v60 = vld [vmem:[%s1434_s7 + $0x40] sm:$0xff]   ;;  %v940_v63 = vld [vmem:[%s1434_s7 + $0x48] sm:$0xff]   ;;  %v943_v2 = vld [vmem:[%s1434_s7 + $0x50] sm:$0xff]  }
  0x68   :  { %304 = vmatpush1.bf16.msra.mxu0 %v913_v25  ;;  %v938_v61 = vld [vmem:[%s1434_s7] sm:$0xff]   ;;  %v941_v0 = vld [vmem:[%s1434_s7 + $0x8] sm:$0xff]   ;;  %v944_v3 = vld [vmem:[%s1434_s7 + $0x10] sm:$0xff]   ;;  %p1081_p2 = pnand %p1080_p1, %p1074_p12 }
  0x69   :  { %305 = vmatprep.subr.bf16.mxu0 %v914_v33  ;;  %v939_v62 = vld [vmem:[%s1432_s5 + $0x40] sm:$0xff]   ;;  %v942_v1 = vld [vmem:[%s1432_s5 + $0x48] sm:$0xff]   ;;  %v945_v4 = vld [vmem:[%s1432_s5 + $0x50] sm:$0xff]  }
  0x6a   :  { %v946_v5 = vld [vmem:[%s1434_s7 + $0x58] sm:$0xff]   ;;  %v949_v8 = vld [vmem:[%s1434_s7 + $0x60] sm:$0xff]   ;;  %v951_v10 = vld [vmem:[%s1434_s7 + $0x68] sm:$0xff]  }
  0x6b   :  { %v947_v6 = vld [vmem:[%s1434_s7 + $0x18] sm:$0xff]   ;;  %v950_v9 = vld [vmem:[%s1434_s7 + $0x20] sm:$0xff]  }
  0x6c   :  { %306 = vmatpush1.bf16.msra.mxu0 %v916_v36  ;;  %v948_v7 = vld [vmem:[%s1432_s5 + $0x58] sm:$0xff]  }
  0x6d   :  { %538 = vmatprep.subr.bf16.mxu0 %v919_v37 }
 0x133   :  { %v152_v13 = vpop.f32.mrb[0].mxu1 }
 0x134   :  { %v153_v14 = vadd.f32 %v152_v13, %v107_v12  ;;  %v878_v15 = vpop.f32.mrb[1].mxu1  ;;  %v952_v12 = vld [vmem:[%s1434_s7 + $0x28] sm:$0xff]   ;;  %v953_v13 = vld [vmem:[%s1434_s7 + $0x70] sm:$0xff]  }
 0x135   :  { %v155_v16 = vpop.f32.mrb[2].mxu1  ;;  %v955_v15 = vld [vmem:[%s1434_s7 + $0x78] sm:$0xff]  }
 0x136   :  { %v158_v17 = vmax.f32 %v153_v14, 0.0  ;;  %v879_v18 = vpop.f32.mrb[3].mxu1  ;;  %v954_v14 = vld [vmem:[%s1434_s7 + $0x30] sm:$0xff]   ;;  %v956_v16 = vld [vmem:[%s1434_s7 + $0x38] sm:$0xff]  }
 0x138   :  { %v163_v19 = vpack.c.bf16 %v158_v17, %v158_v17  ;;  %v243_v17 = vld [vmem:[#allocation10 + $0x40] sm:$0x11] }
 0x139   :  { %v245_v18 = vunpack.c.l.bf16 %v243_v17 }
 0x13a   :  { %885 = vmatmul.mubr.msk.bf16.vlgmr.msra.gmra.mrb[4].mxu1 %vm178_vm3, %v163_v19  ;;  %v246_v19 = vunpack.c.h.bf16 %v243_v17 }
 0x13b   :  { %450 = vmatpush1.bf16.msra.mxu1 %v929_v40  ;;  %v250_v20 = vrot.slane %v245_v18, %v1258_v11 }
 0x13c   :  { %451 = vmatprep.subr.bf16.mxu1 %v1138_v38  ;;  %v254_v21 = vrot.slane %v246_v19, %v1258_v11 }
 0x13f   :  { %452 = vmatpush1.bf16.msra.mxu1 %v930_v41 }
 0x140   :  { %453 = vmatprep.subr.bf16.mxu1 %v1138_v38 }
 0x143   :  { %454 = vmatpush1.bf16.msra.mxu1 %v931_v42  ;;  %v366_v42 = vld [vmem:[%s1432_s5 + $0x60] sm:$0x1] }
 0x144   :  { %455 = vmatprep.subr.bf16.mxu1 %v1138_v38 }
 0x147   :  { %456 = vmatpush1.bf16.msra.mxu1 %v932_v46 }
 0x148   :  { %457 = vmatprep.subr.bf16.mxu1 %v1138_v38 }
 0x14b   :  { %458 = vmatpush1.bf16.msra.mxu1 %v933_v51 }
 0x14c   :  { %459 = vmatprep.subr.bf16.mxu1 %v1138_v38 }
 0x14f   :  { %460 = vmatpush1.bf16.msra.mxu1 %v934_v54 }
 0x150   :  { %461 = vmatprep.subr.bf16.mxu1 %v1138_v38 }
 0x153   :  { %462 = vmatpush1.bf16.msra.mxu1 %v935_v57 }
 0x154   :  { %463 = vmatprep.subr.bf16.mxu1 %v1138_v38 }
 0x157   :  { %464 = vmatpush1.bf16.msra.mxu1 %v936_v59 }
 0x158   :  { %465 = vmatprep.subr.bf16.mxu1 %v1138_v38 }
 0x15b   :  { %466 = vmatpush1.bf16.msra.mxu1 %v939_v62 }
 0x15c   :  { %467 = vmatprep.subr.bf16.mxu1 %v1138_v38 }
 0x15f   :  { %468 = vmatpush1.bf16.msra.mxu1 %v942_v1 }
 0x160   :  { %469 = vmatprep.subr.bf16.mxu1 %v1138_v38 }
 0x163   :  { %470 = vmatpush1.bf16.msra.mxu1 %v945_v4 }
 0x164   :  { %471 = vmatprep.subr.bf16.mxu1 %v1138_v38 }
 0x167   :  { %472 = vmatpush1.bf16.msra.mxu1 %v948_v7 }
 0x20d   :  { %v220_v29 = vpop.f32.mrb[4].mxu1 }
 0x20e   :  { %v221_v30 = vadd.f32 %v220_v29, %v168_v28  ;;  %v886_v31 = vpop.f32.mrb[5].mxu1 }
 0x20f   :  { %v223_v32 = vpop.f32.mrb[6].mxu1 }
 0x210   :  { %v227_v34 = vmul.f32 1.442695, %v221_v30  ;;  %v887_v35 = vpop.f32.mrb[7].mxu1 }
 0x212   :  { %957 = vpow2.f32 %v227_v34 }
 0x21c   :  { %v958_v39 = vpop.eup %957 }
 0x21d   :  { %230 = vrot.lane.b32.xlu0 %v958_v39, %s1130_s10 }
 0x28f   :  { %v231_v44 = vpop.permute.xlu0 %230 }
 0x290   :  { %v233_v45 = vmul.f32 %v231_v44, %v226_v43  ;;  %v369_v43 = vunpack.c.l.bf16 %v366_v42 }
 0x292   :  { %v1283_v47 = vadd.f32 %v233_v45, %v221_v30  ;;  %v373_v44 = vrot.slane %v369_v43, %v1258_v11 }
 0x294   :  { %v244_v49 = vpack.c.bf16 %v1283_v47, %v1283_v47  ;;  %580 = vrot.lane.b32.xlu0 %v1283_v47, %s1130_s10 }
 0x296   :  { %807 = vmatmul.mubr.msk.bf16.vlgmr.msra.gmra.mrb[0].mxu0 %vm295_vm4, %v244_v49 }
 0x297   :  { %539 = vmatpush1.bf16.msra.mxu0 %v917_v48  ;;  %570 = vmatprep.mubr.bf16.mxu0 %v1138_v38 }
 0x298   :  { %540 = vmatprep.subr.bf16.mxu0 %v922_v50 }
 0x29b   :  { %541 = vmatpush1.bf16.msra.mxu0 %v920_v52 }
 0x29c   :  { %542 = vmatprep.subr.bf16.mxu0 %v925_v53 }
 0x29f   :  { %543 = vmatpush1.bf16.msra.mxu0 %v923_v55 }
 0x2a0   :  { %544 = vmatprep.subr.bf16.mxu0 %v928_v56 }
 0x2a3   :  { %545 = vmatpush1.bf16.msra.mxu0 %v926_v58 }
 0x2a4   :  { %852 = vmatprep.subr.bf16.mxu0 %v937_v60 }
 0x2a6   :  { %829 = vmatmul.mubr.msk.bf16.vlgmr.msra.gmra.mrb[4].mxu0 %vm295_vm4, %v244_v49 }
 0x2a7   :  { %853 = vmatpush3.bf16.msra.mxu0 %v938_v61 }
 0x2a8   :  { %854 = vmatprep.subr.bf16.mxu0 %v940_v63 }
 0x2ab   :  { %855 = vmatpush3.bf16.msra.mxu0 %v941_v0 }
 0x2ac   :  { %856 = vmatprep.subr.bf16.mxu0 %v943_v2 }
 0x2af   :  { %857 = vmatpush3.bf16.msra.mxu0 %v944_v3 }
 0x2b0   :  { %858 = vmatprep.subr.bf16.mxu0 %v946_v5 }
 0x2b3   :  { %859 = vmatpush3.bf16.msra.mxu0 %v947_v6 }
 0x2b4   :  { %860 = vmatprep.subr.bf16.mxu0 %v949_v8 }
 0x2b7   :  { %861 = vmatpush3.bf16.msra.mxu0 %v950_v9 }
 0x2b8   :  { %862 = vmatprep.subr.bf16.mxu0 %v951_v10 }
 0x2bb   :  { %863 = vmatpush3.bf16.msra.mxu0 %v952_v12 }
 0x2bc   :  { %864 = vmatprep.subr.bf16.mxu0 %v953_v13 }
 0x2bf   :  { %865 = vmatpush3.bf16.msra.mxu0 %v954_v14 }
 0x2c0   :  { %866 = vmatprep.subr.bf16.mxu0 %v955_v15 }
 0x2c3   :  { %867 = vmatpush3.bf16.msra.mxu0 %v956_v16 }
 0x306   :  { %v581_v32 = vpop.permute.xlu0 %580 }
 0x307   :  { %v583_v34 = vsel %vm295_vm4, %v1283_v47, %v581_v32 }
 0x369   :  { %v333_v22 = vpop.f32.mrb[0].mxu0 }
 0x36a   :  { %v334_v23 = vadd.f32 %v333_v22, %v250_v20  ;;  %v335_v24 = vpop.f32.mrb[1].mxu0 }
 0x36b   :  { %v336_v25 = vadd.f32 %v335_v24, %v254_v21  ;;  %v337_v26 = vpop.f32.mrb[2].mxu0 }
 0x36c   :  { %v340_v27 = vmax.f32 %v334_v23, 0.0  ;;  %v338_v28 = vpop.f32.mrb[3].mxu0 }
 0x36d   :  { %v341_v29 = vmax.f32 %v336_v25, 0.0 }
 0x36e   :  { %v367_v31 = vpack.c.bf16 %v340_v27, %v340_v27 }
 0x36f   :  { %v368_v30 = vpack.c.bf16 %v341_v29, %v341_v29 }
 0x371   :  { %820 = vmatprep.mubr.msk.bf16.mxu1 %vm295_vm4, %v368_v30 }
 0x372   :  { %482 = vmatmul.mubr.bf16.vlgmr.msra.gmra.mrb[8].mxu1 %v367_v31 }
 0x379   :  { %v572_v33 = vpop.f32.mrb[4].mxu0 }
 0x37a   :  { %v584_v35 = vmul.f32 %v583_v34, %v572_v33  ;;  %v574_v36 = vpop.f32.mrb[5].mxu0 }
 0x37b   :  { %v585_v37 = vmul.f32 %v583_v34, %v574_v36  ;;  %v576_v38 = vpop.f32.mrb[6].mxu0 }
 0x37c   :  { %v577_v39 = vpop.f32.mrb[7].mxu0  ;;  %v586_v41 = vpack.c.bf16 %v584_v35, %v584_v35 }
 0x37d   :  { %v587_v40 = vpack.c.bf16 %v585_v37, %v585_v37 }
 0x37f   :  { %748 = vmatprep.mubr.bf16.mxu0 %v587_v40 }
 0x380   :  { %749 = vmatmul.mubr.bf16.vlgmr.msra.gmra.mrb[8].mxu0 %v586_v41 }
 0x445   :  { %v483_v45 = vpop.f32.mrb[8].mxu1 }
 0x446   :  { %v484_v46 = vadd.f32 %v483_v45, %v373_v44  ;;  %v485_v47 = vpop.f32.mrb[9].mxu1 }
 0x447   :  { %v486_v48 = vpop.f32.mrb[10].mxu1 }
 0x448   :  { %489 = vst [vmem:[#allocation11] sm:$0xff] %v484_v46  ;;  %v487_v49 = vpop.f32.mrb[11].mxu1 }
 0x449   :  { %1084 = shalt.err (!%p1081_p2)
}
 0x44a   :  { %s1085_s12 = scalar_lea.hbm %s1435_s8, 128 }
 0x44b   :  { %p1086_p3 = scmp.ne.s32.totalorder %s1435_s8, %s1085_s12  ;;  %p1089_p4 = scmp.lt.u32.totalorder %s1085_s12, %s1435_s8 }
 0x44d   :  { %p1091_p5 = pnand %p1089_p4, %p1086_p3 }
 0x44f   :  { %1094 = shalt.err (!%p1091_p5)
}
 0x450   :  { %772 = dma.vmem_to_hbm [thread:$0]  %s770_s3, 128, %s1435_s8, [#allocation4]  }
 0x451   :  { %s1140_s30 = smov [#allocation12]  }
 0x452   :  { %s779_s11 = sshll.u32 %s1140_s30, 4  ;;  %s780_s11 = int_to_ptr.vmem [resolvable:$true] %s779_s11 }
 0x453   :  { %v868_v11 = vpop.f32.mrb[8].mxu0  ;;  %s1095_s1 = scalar_lea.vmem %s780_s11, 128  ;;  %p1100_p7 = scmp.lt.s32.totalorder %s780_s11, %s780_s11 }
 0x454   :  { %v869_v50 = vpop.f32.mrb[9].mxu0  ;;  %p1096_p6 = scmp.ne.s32.totalorder %s780_s11, %s1095_s1  ;;  %p1101_p8 = scmp.lt.s32.totalorder %s1095_s1, %s1095_s1 }
 0x455   :  { %v870_v51 = vadd.f32 %v869_v50, %v868_v11  ;;  %v871_v52 = vpop.f32.mrb[10].mxu0 }
 0x456   :  { %v872_v53 = vpop.f32.mrb[11].mxu0  ;;  %p1102_p9 = por %p1101_p8, %p1100_p7 }
 0x457   :  { %v846_v54 = vmul.f32 -1.442695, %v870_v51 }
 0x458   :  { %p1103_p10 = pnand %p1102_p9, %p1096_p6 }
 0x459   :  { %959 = vpow2.f32 %v846_v54 }
 0x463   :  { %v960_v55 = vpop.eup %959 }
 0x464   :  { %v759_v56 = vadd.f32 1.0, %v960_v55 }
 0x466   :  { %961 = vrcp.f32 %v759_v56 }
 0x470   :  { %v962_v57 = vpop.eup %961 }
 0x471   :  { %762 = vst.msk [vmem:[#allocation12] sm:$0xff] %vm114_vm1, %v962_v57 }
 0x472   :  { %1106 = shalt.err (!%p1103_p10)
}
 0x473   :  { %s1107_s14 = scalar_lea.hbm %s1436_s9, 128 }
 0x474   :  { %p1108_p11 = scmp.ne.s32.totalorder %s1436_s9, %s1107_s14  ;;  %p1111_p12 = scmp.lt.u32.totalorder %s1107_s14, %s1436_s9 }
 0x476   :  { %p1113_p13 = pnand %p1111_p12, %p1108_p11 }
 0x478   :  { %1116 = shalt.err (!%p1113_p13)
}
 0x479   :  { %782 = dma.vmem_to_hbm [thread:$0]  %s780_s11, 128, %s1436_s9, [#allocation13]  }
 0x47a   :  { %1123 = dma.done.wait [#allocation4], 128  }
 0x47b   :  { %1124 = vsyncadd [#allocation4], 4294967168 }
 0x47c   :  { %1125 = dma.done.wait [#allocation13], 128  }
 0x47d   :  { %1126 = vsyncadd [#allocation13], 4294967168 }
 0x47e   :  { %789 = vsyncpa [#allocation3], 1 }
 0x47f   :  { %790 = vsyncpa [#allocation6], 1 }
 0x480   :  { %791 = vsyncpa [#allocation9], 1 }
 0x481   :  { %792 = vsyncpa [#allocation4], 1 }
 0x482   :  { %793 = vsyncpa [#allocation13], 1 }

</bundles_post_ra>
